<compile_context>
chip_gen: v5e
topology: v5e:2x2
jax: 0.10.0
libtpu: 0.0.40
codegen_flags: <defaults>
</compile_context>

<pallas_src>
import functools

import jax
import jax.numpy as jnp
from jax.experimental import pallas as pl
from jax.experimental.pallas import tpu as pltpu

LANE = 128     # lane width: pad feature dims to this so stores are lane-dense
SUBLANE = 8    # sublane granularity for batch tiles


def _round_up(n, m):
    return ((n + m - 1) // m) * m


def fcq_kernel(x_ref, w0_ref, b0_ref, w1_ref, b1_ref, w2_ref, b2_ref, o_ref):
    """One batch tile of: out = relu(relu(x@W0+b0)@W1+b1)@W2+b2.

    Matmul operands arrive in whatever dtype the wrapper chose (f32 or bf16);
    accumulation / bias add / ReLU are kept in f32.
    """
    cd = x_ref.dtype
    h = jnp.dot(x_ref[...], w0_ref[...], preferred_element_type=jnp.float32)
    h = jnp.maximum(h + b0_ref[...], 0.0)
    h = jnp.dot(h.astype(cd), w1_ref[...], preferred_element_type=jnp.float32)
    h = jnp.maximum(h + b1_ref[...], 0.0)
    o = jnp.dot(h.astype(cd), w2_ref[...], preferred_element_type=jnp.float32)
    o_ref[...] = (o + b2_ref[...]).astype(o_ref.dtype)


@functools.partial(jax.jit, static_argnames=("batch_tile", "compute_dtype"))
def fcq_forward(x, params, *, batch_tile=512, compute_dtype=jnp.float32):
    """x: [B, input_dim] float32. params: dict of weights [in,out] / biases [1,out]."""
    w0, b0, w1, b1, w2, b2 = (params["w0"], params["b0"], params["w1"],
                              params["b1"], params["w2"], params["b2"])
    B, in_dim = x.shape
    h0, h1, out_dim = w0.shape[1], w1.shape[1], w2.shape[1]

    # --- lane-dense padding: hidden & output feature dims -> multiples of 128.
    # Zero padding preserves semantics (relu(0)=0, padded weight rows are 0).
    h0p, h1p, outp = (_round_up(d, LANE) for d in (h0, h1, out_dim))
    w0p = jnp.pad(w0, ((0, 0), (0, h0p - h0)))
    w1p = jnp.pad(w1, ((0, h0p - h0), (0, h1p - h1)))
    w2p = jnp.pad(w2, ((0, h1p - h1), (0, outp - out_dim)))
    b0p = jnp.pad(b0, ((0, 0), (0, h0p - h0)))
    b1p = jnp.pad(b1, ((0, 0), (0, h1p - h1)))
    b2p = jnp.pad(b2, ((0, 0), (0, outp - out_dim)))

    # --- batch tiling: pad batch to a multiple of the tile, grid over tiles.
    # TB<=512 keeps per-step VMEM (x tile + padded out tile, double-buffered)
    # tiny even under v7x's 64 MiB VMEM.
    tb = _round_up(min(batch_tile, _round_up(B, SUBLANE)), SUBLANE)
    bp = _round_up(B, tb)
    xp = jnp.pad(x, ((0, bp - B), (0, 0)))

    # Matmul operands in compute_dtype (bf16 halves DMA bytes + MXU passes on
    # v6e/v7x); biases stay f32 so the elementwise path is f32 everywhere.
    xp = xp.astype(compute_dtype)
    w0p, w1p, w2p = (w.astype(compute_dtype) for w in (w0p, w1p, w2p))

    # Weights/biases: constant index_map -> fetched once, resident across steps.
    const = lambda shape: pl.BlockSpec(shape, lambda i: (0, 0))

    out_padded = pl.pallas_call(
        fcq_kernel,
        out_shape=jax.ShapeDtypeStruct((bp, outp), jnp.float32),
        grid=(bp // tb,),
        in_specs=[
            pl.BlockSpec((tb, in_dim), lambda i: (i, 0)),
            const(w0p.shape), const(b0p.shape),
            const(w1p.shape), const(b1p.shape),
            const(w2p.shape), const(b2p.shape),
        ],
        out_specs=pl.BlockSpec((tb, outp), lambda i: (i, 0)),
        compiler_params=pltpu.CompilerParams(
            dimension_semantics=("parallel",)),
    )(xp, w0p, b0p, w1p, b1p, w2p, b2p)

    return out_padded[:B, :out_dim]


def init_fcq_params(key, input_dim, output_dim, hidden_dims=(32, 32)):
    """Deterministic init mimicking torch.nn.Linear default (U[-1/sqrt(fan_in), +])."""
    dims = [input_dim, *hidden_dims, output_dim]
    params = {}
    for i, (fan_in, fan_out) in enumerate(zip(dims[:-1], dims[1:])):
        key, kw, kb = jax.random.split(key, 3)
        bound = 1.0 / (fan_in ** 0.5)
        # stored as [in, out]; biases kept 2-D [1, out] for TPU-friendly broadcast
        params[f"w{i}"] = jax.random.uniform(
            kw, (fan_in, fan_out), jnp.float32, -bound, bound)
        params[f"b{i}"] = jax.random.uniform(
            kb, (1, fan_out), jnp.float32, -bound, bound)
    return params


def reference_forward(x, params):
    h = jnp.maximum(x @ params["w0"] + params["b0"], 0.0)
    h = jnp.maximum(h @ params["w1"] + params["b1"], 0.0)
    return h @ params["w2"] + params["b2"]


# TODO(synk): torch-side utilities (_format device handling, load() of replay
# experiences) are host-side plumbing with no kernel equivalent; not ported.

if __name__ == "__main__":
    key = jax.random.PRNGKey(0)
    k_param, k_x, k_xb = jax.random.split(key, 3)

    batch, input_dim, output_dim = 2, 8, 4
    params = init_fcq_params(k_param, input_dim, output_dim, hidden_dims=(32, 32))

    # 1) small single-shot case (matches typical FCQ usage), f32 matmul path
    x = jax.random.normal(k_x, (batch, input_dim), dtype=jnp.float32)
    out = fcq_forward(x, params)
    jax.block_until_ready(out)
    ref = reference_forward(x, params)
    assert out.shape == (batch, output_dim)
    assert jnp.allclose(out, ref, atol=1e-5, rtol=1e-5)

    # 2) batched case exercising the batch grid (padding to 1024, 2 tiles)
    xb = jax.random.normal(k_xb, (1000, input_dim), dtype=jnp.float32)
    out_b = fcq_forward(xb, params)
    jax.block_until_ready(out_b)
    ref_b = reference_forward(xb, params)
    assert out_b.shape == (1000, output_dim)
    assert jnp.allclose(out_b, ref_b, atol=1e-5, rtol=1e-5)

    # 3) bf16 matmul-operand path (v6e/v7x); accumulation stays f32
    out_bf16 = fcq_forward(xb, params, compute_dtype=jnp.bfloat16)
    jax.block_until_ready(out_bf16)
    assert jnp.allclose(out_bf16, ref_b, atol=2e-2, rtol=2e-2)

    print("KERNEL_OK")
</pallas_src>

<mosaic_0001>
module attributes {stable_mosaic.version = 11 : i64} {
  func.func @fcq_kernel(%arg0: i32, %arg1: memref<8x8xf32, #tpu.memory_space<vmem>>, %arg2: memref<8x128xf32, #tpu.memory_space<vmem>>, %arg3: memref<1x128xf32, #tpu.memory_space<vmem>>, %arg4: memref<128x128xf32, #tpu.memory_space<vmem>>, %arg5: memref<1x128xf32, #tpu.memory_space<vmem>>, %arg6: memref<128x128xf32, #tpu.memory_space<vmem>>, %arg7: memref<1x128xf32, #tpu.memory_space<vmem>>, %arg8: memref<8x128xf32, #tpu.memory_space<vmem>>) attributes {dimension_semantics = [#tpu.dimension_semantics<parallel>], iteration_bounds = array<i64: 1>, scalar_prefetch = 0 : i64, scratch_operands = 0 : i64, tpu.core_type = #tpu.core_type<tc>, window_params = [{transform_indices = @transform_0, window_bounds = array<i64: 8, 8>}, {pipeline_mode = #tpu.pipeline_mode<synchronous>, transform_indices = @transform_1, window_bounds = array<i64: 8, 128>}, {pipeline_mode = #tpu.pipeline_mode<synchronous>, transform_indices = @transform_2, window_bounds = array<i64: 1, 128>}, {pipeline_mode = #tpu.pipeline_mode<synchronous>, transform_indices = @transform_3, window_bounds = array<i64: 128, 128>}, {pipeline_mode = #tpu.pipeline_mode<synchronous>, transform_indices = @transform_4, window_bounds = array<i64: 1, 128>}, {pipeline_mode = #tpu.pipeline_mode<synchronous>, transform_indices = @transform_5, window_bounds = array<i64: 128, 128>}, {pipeline_mode = #tpu.pipeline_mode<synchronous>, transform_indices = @transform_6, window_bounds = array<i64: 1, 128>}, {transform_indices = @transform_7, window_bounds = array<i64: 8, 128>}]} {
    %c0 = arith.constant 0 : index
    %c0_0 = arith.constant 0 : index
    %0 = vector.load %arg1[%c0, %c0_0] : memref<8x8xf32, #tpu.memory_space<vmem>>, vector<8x8xf32>
    %c0_1 = arith.constant 0 : index
    %c0_2 = arith.constant 0 : index
    %1 = vector.load %arg2[%c0_1, %c0_2] : memref<8x128xf32, #tpu.memory_space<vmem>>, vector<8x128xf32>
    %cst = arith.constant dense<0.000000e+00> : vector<8x128xf32>
    %2 = tpu.matmul %0, %1, %cst {dimension_numbers = #tpu.dot_dimension_numbers<[1], [0], [0], [1], [0, 0, 1, 1], [], []>} : vector<8x8xf32>, vector<8x128xf32>, vector<8x128xf32> -> vector<8x128xf32>
    %c0_3 = arith.constant 0 : index
    %c0_4 = arith.constant 0 : index
    %3 = vector.load %arg3[%c0_3, %c0_4] : memref<1x128xf32, #tpu.memory_space<vmem>>, vector<1x128xf32>
    %4 = vector.broadcast %3 : vector<1x128xf32> to vector<8x128xf32>
    %5 = arith.addf %2, %4 : vector<8x128xf32>
    %cst_5 = arith.constant 0.000000e+00 : f32
    %6 = vector.broadcast %cst_5 : f32 to vector<8x128xf32>
    %7 = arith.maximumf %5, %6 : vector<8x128xf32>
    %c0_6 = arith.constant 0 : index
    %c0_7 = arith.constant 0 : index
    %8 = vector.load %arg4[%c0_6, %c0_7] : memref<128x128xf32, #tpu.memory_space<vmem>>, vector<128x128xf32>
    %cst_8 = arith.constant dense<0.000000e+00> : vector<8x128xf32>
    %9 = tpu.matmul %7, %8, %cst_8 {dimension_numbers = #tpu.dot_dimension_numbers<[1], [0], [0], [1], [0, 0, 1, 1], [], []>} : vector<8x128xf32>, vector<128x128xf32>, vector<8x128xf32> -> vector<8x128xf32>
    %c0_9 = arith.constant 0 : index
    %c0_10 = arith.constant 0 : index
    %10 = vector.load %arg5[%c0_9, %c0_10] : memref<1x128xf32, #tpu.memory_space<vmem>>, vector<1x128xf32>
    %11 = vector.broadcast %10 : vector<1x128xf32> to vector<8x128xf32>
    %12 = arith.addf %9, %11 : vector<8x128xf32>
    %cst_11 = arith.constant 0.000000e+00 : f32
    %13 = vector.broadcast %cst_11 : f32 to vector<8x128xf32>
    %14 = arith.maximumf %12, %13 : vector<8x128xf32>
    %c0_12 = arith.constant 0 : index
    %c0_13 = arith.constant 0 : index
    %15 = vector.load %arg6[%c0_12, %c0_13] : memref<128x128xf32, #tpu.memory_space<vmem>>, vector<128x128xf32>
    %cst_14 = arith.constant dense<0.000000e+00> : vector<8x128xf32>
    %16 = tpu.matmul %14, %15, %cst_14 {dimension_numbers = #tpu.dot_dimension_numbers<[1], [0], [0], [1], [0, 0, 1, 1], [], []>} : vector<8x128xf32>, vector<128x128xf32>, vector<8x128xf32> -> vector<8x128xf32>
    %c0_15 = arith.constant 0 : index
    %c0_16 = arith.constant 0 : index
    %17 = vector.load %arg7[%c0_15, %c0_16] : memref<1x128xf32, #tpu.memory_space<vmem>>, vector<1x128xf32>
    %18 = vector.broadcast %17 : vector<1x128xf32> to vector<8x128xf32>
    %19 = arith.addf %16, %18 : vector<8x128xf32>
    %c0_17 = arith.constant 0 : index
    %c0_18 = arith.constant 0 : index
    %20 = vector.load %arg8[%c0_17, %c0_18] : memref<8x128xf32, #tpu.memory_space<vmem>>, vector<8x128xf32>
    tpu.vector_store %arg8[%c0_17, %c0_18], %19 {strides = array<i32>} : memref<8x128xf32, #tpu.memory_space<vmem>>, vector<8x128xf32>,
    return
  }
  func.func @transform_0(%arg0: i32) -> (i32, i32) {
    %c0_i32 = arith.constant 0 : i32
    %c0_i32_0 = arith.constant 0 : i32
    return %arg0, %c0_i32 : i32, i32
  }
  func.func @transform_1(%arg0: i32) -> (i32, i32) {
    %c0_i32 = arith.constant 0 : i32
    %c0_i32_0 = arith.constant 0 : i32
    %c0_i32_1 = arith.constant 0 : i32
    return %c0_i32, %c0_i32_0 : i32, i32
  }
  func.func @transform_2(%arg0: i32) -> (i32, i32) {
    %c0_i32 = arith.constant 0 : i32
    %c0_i32_0 = arith.constant 0 : i32
    %c0_i32_1 = arith.constant 0 : i32
    return %c0_i32, %c0_i32_0 : i32, i32
  }
  func.func @transform_3(%arg0: i32) -> (i32, i32) {
    %c0_i32 = arith.constant 0 : i32
    %c0_i32_0 = arith.constant 0 : i32
    %c0_i32_1 = arith.constant 0 : i32
    return %c0_i32, %c0_i32_0 : i32, i32
  }
  func.func @transform_4(%arg0: i32) -> (i32, i32) {
    %c0_i32 = arith.constant 0 : i32
    %c0_i32_0 = arith.constant 0 : i32
    %c0_i32_1 = arith.constant 0 : i32
    return %c0_i32, %c0_i32_0 : i32, i32
  }
  func.func @transform_5(%arg0: i32) -> (i32, i32) {
    %c0_i32 = arith.constant 0 : i32
    %c0_i32_0 = arith.constant 0 : i32
    %c0_i32_1 = arith.constant 0 : i32
    return %c0_i32, %c0_i32_0 : i32, i32
  }
  func.func @transform_6(%arg0: i32) -> (i32, i32) {
    %c0_i32 = arith.constant 0 : i32
    %c0_i32_0 = arith.constant 0 : i32
    %c0_i32_1 = arith.constant 0 : i32
    return %c0_i32, %c0_i32_0 : i32, i32
  }
  func.func @transform_7(%arg0: i32) -> (i32, i32) {
    %c0_i32 = arith.constant 0 : i32
    %c0_i32_0 = arith.constant 0 : i32
    return %arg0, %c0_i32 : i32, i32
  }
}

</mosaic_0001>

<bundles_post_ra>
// kernel: fcq_forward.1
= control target key start
LH: loop header
LB: loop body
LE: loop exit
PB: predicated region body
PF: predicated region fallthrough
CT: control target
= control target key end

     0   :  { %vm32_vm0 = vcmask 64512   ;;  %s301_s1 = inlined_call_operand.vmem [shape: f32[8,128], index: 1, kind: input, shape index: {}]   ;;  %s302_s0 = inlined_call_operand.vmem [shape: f32[8,8], index: 0, kind: input, shape index: {}]   ;;  %s303_s3 = inlined_call_operand.vmem [shape: f32[128,128], index: 3, kind: input, shape index: {}]   ;;  %s304_s2 = inlined_call_operand.vmem [shape: f32[1,128], index: 2, kind: input, shape index: {}]   ;;  %s305_s4 = inlined_call_operand.vmem [shape: f32[1,128], index: 4, kind: input, shape index: {}]   ;;  %s306_s5 = inlined_call_operand.vmem [shape: f32[128,128], index: 5, kind: input, shape index: {}]   ;;  %s307_s6 = inlined_call_operand.vmem [shape: f32[1,128], index: 6, kind: input, shape index: {}]   ;;  %s308_s7 = inlined_call_operand.vmem [shape: f32[8,128], index: 7, kind: output, shape index: {}]  }
   0x1   :  { %v27_v0 = vld [vmem:[%s301_s1] sm:$0xff]  ;;  %v72_v2 = vld [vmem:[%s303_s3 + $0x78] sm:$0xff]  ;;  %v71_v3 = vld [vmem:[%s303_s3 + $0x70] sm:$0xff] }
   0x2   :  { %v26_v1 = vld [vmem:[%s302_s0] sm:$0xff]  ;;  %51 = vmatpush.msra.mxu0 %v27_v0  ;;  %77 = vmatpush.msra.mxu1 %v72_v2  ;;  %v70_v4 = vld [vmem:[%s303_s3 + $0x68] sm:$0xff]  ;;  %v68_v6 = vld [vmem:[%s303_s3 + $0x58] sm:$0xff] }
   0x3   :  { %143 = vmatmul.msk.f32.vlgmr.msra.gmra.mxu0 %vm32_vm0, %v26_v1  ;;  %v69_v5 = vld [vmem:[%s303_s3 + $0x60] sm:$0xff]  ;;  %v67_v7 = vld [vmem:[%s303_s3 + $0x50] sm:$0xff]  ;;  %v66_v8 = vld [vmem:[%s303_s3 + $0x48] sm:$0xff] }
   0x4   :  { %78 = vmatpush.msra.mxu1 %v71_v3  ;;  %v65_v9 = vld [vmem:[%s303_s3 + $0x40] sm:$0xff]  ;;  %v64_v10 = vld [vmem:[%s303_s3 + $0x38] sm:$0xff]  ;;  %v63_v11 = vld [vmem:[%s303_s3 + $0x30] sm:$0xff] }
   0x5   :  { %v62_v12 = vld [vmem:[%s303_s3 + $0x28] sm:$0xff]  ;;  %v61_v13 = vld [vmem:[%s303_s3 + $0x20] sm:$0xff]  ;;  %v60_v14 = vld [vmem:[%s303_s3 + $0x18] sm:$0xff] }
   0x6   :  { %79 = vmatpush.msra.mxu1 %v70_v4  ;;  %v59_v15 = vld [vmem:[%s303_s3 + $0x10] sm:$0xff]  ;;  %v58_v16 = vld [vmem:[%s303_s3 + $0x8] sm:$0xff]  ;;  %v57_v17 = vld [vmem:[%s303_s3] sm:$0xff] }
   0x7   :  { %v113_v18 = vld [vmem:[%s306_s5 + $0x78] sm:$0xff]  ;;  %v112_v19 = vld [vmem:[%s306_s5 + $0x70] sm:$0xff]  ;;  %v111_v20 = vld [vmem:[%s306_s5 + $0x68] sm:$0xff] }
   0x8   :  { %80 = vmatpush.msra.mxu1 %v69_v5  ;;  %118 = vmatpush.msra.mxu2 %v113_v18  ;;  %v110_v21 = vld [vmem:[%s306_s5 + $0x60] sm:$0xff]  ;;  %v109_v22 = vld [vmem:[%s306_s5 + $0x58] sm:$0xff]  ;;  %v108_v23 = vld [vmem:[%s306_s5 + $0x50] sm:$0xff] }
   0x9   :  { %v107_v24 = vld [vmem:[%s306_s5 + $0x48] sm:$0xff]  ;;  %v106_v25 = vld [vmem:[%s306_s5 + $0x40] sm:$0xff]  ;;  %v105_v26 = vld [vmem:[%s306_s5 + $0x38] sm:$0xff] }
   0xa   :  { %81 = vmatpush.msra.mxu1 %v68_v6  ;;  %119 = vmatpush.msra.mxu2 %v112_v19  ;;  %v104_v27 = vld [vmem:[%s306_s5 + $0x30] sm:$0xff]  ;;  %v103_v28 = vld [vmem:[%s306_s5 + $0x28] sm:$0xff]  ;;  %v102_v29 = vld [vmem:[%s306_s5 + $0x20] sm:$0xff] }
   0xb   :  { %v101_v30 = vld [vmem:[%s306_s5 + $0x18] sm:$0xff]  ;;  %v144_v31 = vld [vmem:[%s304_s2] ss:$0 sm:$0xff]  ;;  %v100_v35 = vld [vmem:[%s306_s5 + $0x10] sm:$0xff] }
   0xc   :  { %82 = vmatpush.msra.mxu1 %v67_v7  ;;  %120 = vmatpush.msra.mxu2 %v111_v20  ;;  %v99_v36 = vld [vmem:[%s306_s5 + $0x8] sm:$0xff]  ;;  %v98_v37 = vld [vmem:[%s306_s5] sm:$0xff] }
   0xd   :  { %v145_v38 = vld [vmem:[%s305_s4] ss:$0 sm:$0xff] }
   0xe   :  { %83 = vmatpush.msra.mxu1 %v66_v8  ;;  %121 = vmatpush.msra.mxu2 %v110_v21  ;;  %v146_v42 = vld [vmem:[%s307_s6] ss:$0 sm:$0xff] }
  0x10   :  { %84 = vmatpush.msra.mxu1 %v65_v9  ;;  %122 = vmatpush.msra.mxu2 %v109_v22 }
  0x12   :  { %85 = vmatpush.msra.mxu1 %v64_v10  ;;  %123 = vmatpush.msra.mxu2 %v108_v23 }
  0x14   :  { %86 = vmatpush.msra.mxu1 %v63_v11  ;;  %124 = vmatpush.msra.mxu2 %v107_v24 }
  0x16   :  { %87 = vmatpush.msra.mxu1 %v62_v12  ;;  %125 = vmatpush.msra.mxu2 %v106_v25 }
  0x18   :  { %88 = vmatpush.msra.mxu1 %v61_v13  ;;  %126 = vmatpush.msra.mxu2 %v105_v26 }
  0x1a   :  { %89 = vmatpush.msra.mxu1 %v60_v14  ;;  %127 = vmatpush.msra.mxu2 %v104_v27 }
  0x1c   :  { %90 = vmatpush.msra.mxu1 %v59_v15  ;;  %128 = vmatpush.msra.mxu2 %v103_v28 }
  0x1e   :  { %91 = vmatpush.msra.mxu1 %v58_v16  ;;  %129 = vmatpush.msra.mxu2 %v102_v29 }
  0x20   :  { %92 = vmatpush.msra.mxu1 %v57_v17  ;;  %130 = vmatpush.msra.mxu2 %v101_v30 }
  0x22   :  { %131 = vmatpush.msra.mxu2 %v100_v35 }
  0x24   :  { %132 = vmatpush.msra.mxu2 %v99_v36 }
  0x26   :  { %133 = vmatpush.msra.mxu2 %v98_v37 }
  0x80   :  { %v53_v32 = vpop.f32.mrf.mxu0 }
  0x81   :  { %v54_v33 = vadd.f32 %v144_v31, %v53_v32 }
  0x83   :  { %v56_v34 = vmax.f32 %v54_v33, 0.0 }
  0x85   :  { %93 = vmatmul.f32.vlgmr.msra.gmra.mxu1 %v56_v34 }
 0x102   :  { %v94_v39 = vpop.f32.mrf.mxu1 }
 0x103   :  { %v95_v40 = vadd.f32 %v145_v38, %v94_v39 }
 0x105   :  { %v97_v41 = vmax.f32 %v95_v40, 0.0 }
 0x107   :  { %134 = vmatmul.f32.vlgmr.msra.gmra.mxu2 %v97_v41 }
 0x18a   :  { %v135_v43 = vpop.f32.mrf.mxu2 }
 0x18b   :  { %v136_v44 = vadd.f32 %v146_v42, %v135_v43 }
 0x18d   :  { %138 = vst [vmem:[%s308_s7] sm:$0xff] %v136_v44 }

</bundles_post_ra>
